<compile_context>
chip_gen: v7x
topology: tpu7x:2x2x1
jax: 0.10.0
libtpu: 0.0.40
codegen_flags: <defaults>
</compile_context>

<pallas_src>
import math
import jax
import jax.numpy as jnp
from jax.experimental import pallas as pl
from jax.experimental.pallas import tpu as pltpu

OMEGA = 10.0
EPSILON = 2.0
INV_EPSILON = 1.0 / EPSILON
C_CONST = OMEGA - OMEGA * math.log(1.0 + OMEGA / EPSILON)

LANES = 128
SUBLANES = 8


def _round_up(x, n):
    return ((x + n - 1) // n) * n


def _wing_loss_elem(d):
    """Element-wise wing loss on |target - pred| (f32)."""
    return jnp.where(d < OMEGA, OMEGA * jnp.log1p(d * INV_EPSILON), d - C_CONST)


def _make_wing_sum_kernel(eff_tile, valid_rows):
    """Kernel factory.

    eff_tile   -- rows per block (static).
    valid_rows -- true number of rows in the (m, 128) slab (static).  Rows of
                  the final block beyond this came from an out-of-bounds DMA
                  window (unspecified data) and are masked to zero.
    """
    need_mask = (valid_rows % eff_tile) != 0          # static Python check
    fold_ok = (eff_tile % SUBLANES) == 0              # static Python check

    def kernel(pred_ref, targ_ref, out_ref, acc_ref):
        i = pl.program_id(0)

        @pl.when(i == 0)
        def _():
            acc_ref[...] = jnp.zeros_like(acc_ref)

        d = jnp.abs(targ_ref[...].astype(jnp.float32)
                    - pred_ref[...].astype(jnp.float32))
        loss = _wing_loss_elem(d)

        if need_mask:
            # Global row index of every element; rows >= valid_rows are
            # garbage from the partial final block and must not contribute.
            row = jax.lax.broadcasted_iota(jnp.int32, (eff_tile, LANES), 0)
            loss = jnp.where(i * eff_tile + row < valid_rows, loss, 0.0)

        if fold_ok:
            # Fold (eff_tile, 128) into the vreg-shaped (8, 128) accumulator
            # with pure element-wise vreg adds (no cross-lane work per step).
            acc_ref[...] += loss.reshape(-1, SUBLANES, LANES).sum(axis=0)
        else:
            # Only reached for a single whole-array block whose row count is
            # not a multiple of 8 (small inputs): one sublane reduce is fine.
            acc_ref[0:1, :] += loss.sum(axis=0, keepdims=True)

        @pl.when(i == pl.num_programs(0) - 1)
        def _():
            out_ref[...] = acc_ref[...]

    return kernel


def _wing_partial_sums(pred2, targ2, tile_rows):
    """Streams the (m, 128) slabs and returns an (8, 128) partial-sum block."""
    m = pred2.shape[0]
    if m <= tile_rows:
        eff_tile = m                    # block == full array dims (always legal)
    else:
        eff_tile = tile_rows            # multiple of 8 by construction
    steps = -(-m // eff_tile)

    return pl.pallas_call(
        _make_wing_sum_kernel(eff_tile, m),
        out_shape=jax.ShapeDtypeStruct((SUBLANES, LANES), jnp.float32),
        grid_spec=pltpu.PrefetchScalarGridSpec(
            num_scalar_prefetch=0,
            grid=(steps,),
            in_specs=[
                pl.BlockSpec((eff_tile, LANES), lambda i: (i, 0)),
                pl.BlockSpec((eff_tile, LANES), lambda i: (i, 0)),
            ],
            out_specs=pl.BlockSpec((SUBLANES, LANES), lambda i: (0, 0)),
            scratch_shapes=[pltpu.VMEM((SUBLANES, LANES), jnp.float32)],
        ),
        compiler_params=pltpu.CompilerParams(
            dimension_semantics=("arbitrary",),
            # 2 inputs x 2 buffers x 4 MiB tiles = 16 MiB; raise the scoped
            # limit past v5e's 16 MiB default while staying under v7x's
            # 64 MiB physical VMEM.
            vmem_limit_bytes=48 << 20,
        ),
    )(pred2, targ2)


def wing_loss(pred, target, *, tile_rows=8192):
    assert pred.shape == target.shape
    assert tile_rows % SUBLANES == 0
    numel = pred.size

    flat_p = pred.reshape(-1)           # free bitcast on contiguous input
    flat_t = target.reshape(-1)

    m = numel // LANES                  # full 128-lane rows
    rem = numel - m * LANES             # ragged sub-row tail (< 128 elements)

    total = jnp.float32(0.0)

    if m > 0:
        if rem == 0:
            # Fully lane-aligned: zero-copy reshape, no padding anywhere.
            pred2 = flat_p.reshape(m, LANES)
            targ2 = flat_t.reshape(m, LANES)
        else:
            # Lane-unaligned numel: take the full rows for the kernel.
            pred2 = flat_p[: m * LANES].reshape(m, LANES)
            targ2 = flat_t[: m * LANES].reshape(m, LANES)
        total = total + jnp.sum(_wing_partial_sums(pred2, targ2, tile_rows))

    if rem > 0:
        # Tiny (<128-element) tail handled in plain jnp (negligible cost).
        d = jnp.abs(flat_t[m * LANES:].astype(jnp.float32)
                    - flat_p[m * LANES:].astype(jnp.float32))
        total = total + jnp.sum(_wing_loss_elem(d))

    return (total / jnp.float32(numel)).astype(jnp.float32)


def _wing_loss_ref(pred, target):
    d = jnp.abs(target.astype(jnp.float32) - pred.astype(jnp.float32))
    return jnp.sum(_wing_loss_elem(d)) / d.size


if __name__ == "__main__":
    key = jax.random.PRNGKey(0)
    k1, k2, k3, k4, k5, k6 = jax.random.split(key, 6)

    # 1) Small NCHW-like dense regression output (lane-aligned, zero-copy path).
    shape = (2, 4, 16, 16)
    pred = jax.random.normal(k1, shape, dtype=jnp.float32) * 8.0
    target = jax.random.normal(k2, shape, dtype=jnp.float32) * 8.0
    out = jax.block_until_ready(wing_loss(pred, target))
    ref = _wing_loss_ref(pred, target)
    assert jnp.allclose(out, ref, rtol=1e-5, atol=1e-5), (out, ref)

    # 2) Same data with a tiny tile to exercise the multi-step accumulator path.
    out_b = jax.block_until_ready(wing_loss(pred, target, tile_rows=8))
    assert jnp.allclose(out_b, ref, rtol=1e-5, atol=1e-5), (out_b, ref)

    # 3) Row count not divisible by the tile: exercises in-kernel masking of
    #    the ragged final block (no padding, no extra HBM copy).
    shape3 = (5, 512)                    # 2560 elems -> 20 rows, tile_rows=8
    pred3 = jax.random.normal(k3, shape3, dtype=jnp.float32) * 8.0
    target3 = jax.random.normal(k4, shape3, dtype=jnp.float32) * 8.0
    out3 = jax.block_until_ready(wing_loss(pred3, target3, tile_rows=8))
    ref3 = _wing_loss_ref(pred3, target3)
    assert jnp.allclose(out3, ref3, rtol=1e-5, atol=1e-5), (out3, ref3)

    # 4) Lane-unaligned numel, e.g. (B, landmarks, coords)-style regression
    #    targets: full rows via the kernel + <128-element tail in plain jnp.
    shape4 = (3, 17, 26)                 # 1326 elems -> 10 rows + 46 tail
    pred4 = jax.random.normal(k5, shape4, dtype=jnp.float32) * 8.0
    target4 = jax.random.normal(k6, shape4, dtype=jnp.float32) * 8.0
    out4 = jax.block_until_ready(wing_loss(pred4, target4))
    ref4 = _wing_loss_ref(pred4, target4)
    assert jnp.allclose(out4, ref4, rtol=1e-5, atol=1e-5), (out4, ref4)

    print("KERNEL_OK")
</pallas_src>

<mosaic_0001>
module attributes {stable_mosaic.version = 11 : i64} {
  func.func @kernel(%arg0: i32, %arg1: memref<16x128xf32, #tpu.memory_space<vmem>>, %arg2: memref<16x128xf32, #tpu.memory_space<vmem>>, %arg3: memref<8x128xf32, #tpu.memory_space<vmem>>, %arg4: memref<8x128xf32, #tpu.memory_space<vmem>>) attributes {dimension_semantics = [#tpu.dimension_semantics<arbitrary>], iteration_bounds = array<i64: 1>, scalar_prefetch = 0 : i64, scratch_operands = 1 : i64, tpu.core_type = #tpu.core_type<tc>, window_params = [{transform_indices = @transform_0, window_bounds = array<i64: 16, 128>}, {transform_indices = @transform_1, window_bounds = array<i64: 16, 128>}, {pipeline_mode = #tpu.pipeline_mode<synchronous>, transform_indices = @transform_2, window_bounds = array<i64: 8, 128>}]} {
    %c0_i32 = arith.constant 0 : i32
    %0 = arith.cmpi eq, %arg0, %c0_i32 : i32
    %1 = arith.extui %0 : i1 to i32
    %c0_i32_0 = arith.constant 0 : i32
    %2 = arith.cmpi ne, %1, %c0_i32_0 : i32
    scf.if %2 {
      %cst_14 = arith.constant 0.000000e+00 : f32
      %25 = vector.broadcast %cst_14 : f32 to vector<8x128xf32>
      %c0_15 = arith.constant 0 : index
      %c0_16 = arith.constant 0 : index
      %26 = vector.load %arg4[%c0_15, %c0_16] : memref<8x128xf32, #tpu.memory_space<vmem>>, vector<8x128xf32>
      tpu.vector_store %arg4[%c0_15, %c0_16], %25 {strides = array<i32>} : memref<8x128xf32, #tpu.memory_space<vmem>>, vector<8x128xf32>,
    } else {
    }
    %c0 = arith.constant 0 : index
    %c0_1 = arith.constant 0 : index
    %3 = vector.load %arg2[%c0, %c0_1] : memref<16x128xf32, #tpu.memory_space<vmem>>, vector<16x128xf32>
    %c0_2 = arith.constant 0 : index
    %c0_3 = arith.constant 0 : index
    %4 = vector.load %arg1[%c0_2, %c0_3] : memref<16x128xf32, #tpu.memory_space<vmem>>, vector<16x128xf32>
    %5 = arith.subf %3, %4 : vector<16x128xf32>
    %6 = math.absf %5 : vector<16x128xf32>
    %cst = arith.constant 1.000000e+01 : f32
    %7 = vector.broadcast %cst : f32 to vector<16x128xf32>
    %8 = arith.cmpf olt, %6, %7 : vector<16x128xf32>
    %cst_4 = arith.constant 5.000000e-01 : f32
    %9 = vector.broadcast %cst_4 : f32 to vector<16x128xf32>
    %10 = arith.mulf %6, %9 : vector<16x128xf32>
    %11 = math.log1p %10 : vector<16x128xf32>
    %cst_5 = arith.constant 1.000000e+01 : f32
    %12 = vector.broadcast %cst_5 : f32 to vector<16x128xf32>
    %13 = arith.mulf %12, %11 : vector<16x128xf32>
    %cst_6 = arith.constant -7.9175949 : f32
    %14 = vector.broadcast %cst_6 : f32 to vector<16x128xf32>
    %15 = arith.subf %6, %14 : vector<16x128xf32>
    %16 = arith.select %8, %13, %15 : vector<16x128xi1>, vector<16x128xf32>
    %c0_7 = arith.constant 0 : index
    %c0_8 = arith.constant 0 : index
    %17 = vector.load %arg4[%c0_7, %c0_8] : memref<8x128xf32, #tpu.memory_space<vmem>>, vector<8x128xf32>
    %18 = vector.shape_cast %16 : vector<16x128xf32> to vector<2x8x128xf32>
    %cst_9 = arith.constant dense<0.000000e+00> : vector<8x128xf32>
    %19 = vector.multi_reduction <add>, %18, %cst_9 [0] : vector<2x8x128xf32> to vector<8x128xf32>
    %20 = arith.addf %17, %19 : vector<8x128xf32>
    %c0_10 = arith.constant 0 : index
    %c0_11 = arith.constant 0 : index
    %21 = vector.load %arg4[%c0_10, %c0_11] : memref<8x128xf32, #tpu.memory_space<vmem>>, vector<8x128xf32>
    tpu.vector_store %arg4[%c0_10, %c0_11], %20 {strides = array<i32>} : memref<8x128xf32, #tpu.memory_space<vmem>>, vector<8x128xf32>,
    %c0_i32_12 = arith.constant 0 : i32
    %22 = arith.cmpi eq, %arg0, %c0_i32_12 : i32
    %23 = arith.extui %22 : i1 to i32
    %c0_i32_13 = arith.constant 0 : i32
    %24 = arith.cmpi ne, %23, %c0_i32_13 : i32
    scf.if %24 {
      %c0_14 = arith.constant 0 : index
      %c0_15 = arith.constant 0 : index
      %25 = vector.load %arg4[%c0_14, %c0_15] : memref<8x128xf32, #tpu.memory_space<vmem>>, vector<8x128xf32>
      %c0_16 = arith.constant 0 : index
      %c0_17 = arith.constant 0 : index
      %26 = vector.load %arg3[%c0_16, %c0_17] : memref<8x128xf32, #tpu.memory_space<vmem>>, vector<8x128xf32>
      tpu.vector_store %arg3[%c0_16, %c0_17], %25 {strides = array<i32>} : memref<8x128xf32, #tpu.memory_space<vmem>>, vector<8x128xf32>,
    } else {
    }
    return
  }
  func.func @transform_0(%arg0: i32) -> (i32, i32) {
    %c0_i32 = arith.constant 0 : i32
    %c0_i32_0 = arith.constant 0 : i32
    return %arg0, %c0_i32 : i32, i32
  }
  func.func @transform_1(%arg0: i32) -> (i32, i32) {
    %c0_i32 = arith.constant 0 : i32
    %c0_i32_0 = arith.constant 0 : i32
    return %arg0, %c0_i32 : i32, i32
  }
  func.func @transform_2(%arg0: i32) -> (i32, i32) {
    %c0_i32 = arith.constant 0 : i32
    %c0_i32_0 = arith.constant 0 : i32
    %c0_i32_1 = arith.constant 0 : i32
    return %c0_i32, %c0_i32_0 : i32, i32
  }
}

</mosaic_0001>

<bundles_post_ra>
// kernel: tpu_custom_call.1
= control target key start
LH: loop header
LB: loop body
LE: loop exit
PB: predicated region body
PF: predicated region fallthrough
CT: control target
= control target key end

     0   :  { %7 = vsyncpa [#allocation4], 0  ;;  %s245_s0 = inlined_call_operand.hbm [shape: f32[16,128], index: 0, kind: input, shape index: {}]   ;;  %s246_s1 = inlined_call_operand.hbm [shape: f32[16,128], index: 1, kind: input, shape index: {}]   ;;  %s247_s2 = inlined_call_operand.hbm [shape: f32[8,128], index: 2, kind: output, shape index: {}]  }
   0x1   :  { %8 = vsyncpa [#allocation7], 0 }
   0x2   :  { %9 = vsyncpa [#allocation5], 0  ;;  %s189_s9 = smov [#allocation3]   ;;  %s117_s13 = scalar_lea.hbm %s245_s0, 256 }
   0x3   :  { %s15_s10 = sshll.u32 %s189_s9, 4  ;;  %p118_p0 = scmp.ne.s32.totalorder %s245_s0, %s117_s13  ;;  %s16_s10 = int_to_ptr.vmem [resolvable:$true] %s15_s10 }
   0x4   :  { %p121_p1 = scmp.lt.u32.totalorder %s117_s13, %s245_s0 }
   0x6   :  { %p123_p2 = pnand %p121_p1, %p118_p0 }
   0x8   :  { %126 = shalt.err (!%p123_p2)
}
   0x9   :  { %s127_s18 = scalar_lea.vmem %s16_s10, 256  ;;  %p132_p4 = scmp.lt.s32.totalorder %s16_s10, %s16_s10 }
   0xa   :  { %p128_p3 = scmp.ne.s32.totalorder %s16_s10, %s127_s18  ;;  %p133_p5 = scmp.lt.s32.totalorder %s127_s18, %s127_s18 }
   0xc   :  { %p134_p6 = por %p133_p5, %p132_p4 }
   0xe   :  { %p135_p7 = pnand %p134_p6, %p128_p3 }
  0x10   :  { %138 = shalt.err (!%p135_p7)
}
  0x11   :  { %s190_s19 = smov 128   ;;  %s191_s20 = smov 8  }
  0x12   :  { %21 = dma.hbm_to_vmem [thread:$0]  %s245_s0, 256, %s16_s10, [#allocation4], %s190_s19, %s190_s19, %s191_s20  }
  0x13   :  { %s192_s23 = smov [#allocation6]   ;;  %s139_s27 = scalar_lea.hbm %s246_s1, 256 }
  0x14   :  { %s27_s24 = sshll.u32 %s192_s23, 4  ;;  %p140_p8 = scmp.ne.s32.totalorder %s246_s1, %s139_s27  ;;  %s28_s24 = int_to_ptr.vmem [resolvable:$true] %s27_s24 }
  0x15   :  { %p143_p9 = scmp.lt.u32.totalorder %s139_s27, %s246_s1 }
  0x17   :  { %p145_p10 = pnand %p143_p9, %p140_p8 }
  0x19   :  { %148 = shalt.err (!%p145_p10)
}
  0x1a   :  { %s149_s4 = scalar_lea.vmem %s28_s24, 256  ;;  %p154_p12 = scmp.lt.s32.totalorder %s28_s24, %s28_s24 }
  0x1b   :  { %p150_p11 = scmp.ne.s32.totalorder %s28_s24, %s149_s4  ;;  %p155_p13 = scmp.lt.s32.totalorder %s149_s4, %s149_s4 }
  0x1d   :  { %p156_p0 = por %p155_p13, %p154_p12 }
  0x1f   :  { %p157_p1 = pnand %p156_p0, %p150_p11 }
  0x21   :  { %160 = shalt.err (!%p157_p1)
}
  0x22   :  { %33 = dma.hbm_to_vmem [thread:$0]  %s246_s1, 256, %s28_s24, [#allocation7], %s190_s19, %s190_s19, %s191_s20  }
  0x23   :  { %183 = dma.done.wait [#allocation4], 256  }
  0x24   :  { %184 = vsyncadd [#allocation4], 4294967040 }
  0x25   :  { %185 = dma.done.wait [#allocation7], 256  }
  0x26   :  { %186 = vsyncadd [#allocation7], 4294967040  ;;  %v45_v0 = vld [vmem:[#allocation6] sm:$0xff]  ;;  %v46_v1 = vld [vmem:[#allocation6 + $0x8] sm:$0xff]  ;;  %s193_s1 = smov [#allocation8]  }
  0x27   :  { %v47_v2 = vld [vmem:[#allocation3] sm:$0xff]  ;;  %v48_v3 = vld [vmem:[#allocation3 + $0x8] sm:$0xff]  ;;  %s96_s6 = sshll.u32 %s193_s1, 4  ;;  %s97_s6 = int_to_ptr.vmem [resolvable:$true] %s96_s6 }
  0x28   :  { %v49_v4 = vsub.f32 %v45_v0, %v47_v2  ;;  %v50_v5 = vsub.f32 %v46_v1, %v48_v3  ;;  %s161_s7 = scalar_lea.vmem %s97_s6, 128  ;;  %p166_p3 = scmp.lt.s32.totalorder %s97_s6, %s97_s6 }
  0x29   :  { %p162_p2 = scmp.ne.s32.totalorder %s97_s6, %s161_s7  ;;  %p167_p4 = scmp.lt.s32.totalorder %s161_s7, %s161_s7 }
  0x2a   :  { %v51_v6 = vand.u32 2147483647, %v49_v4  ;;  %v52_v7 = vand.u32 2147483647, %v50_v5 }
  0x2b   :  { %p168_p5 = por %p167_p4, %p166_p3 }
  0x2c   :  { %v55_v8 = vmul.f32 0.5, %v51_v6  ;;  %v56_v9 = vmul.f32 0.5, %v52_v7  ;;  %v106_v24 = vadd.f32 7.917595, %v51_v6  ;;  %vm53_vm2 = vcmp.lt.f32.partialorder %v51_v6, 10.0 }
  0x2d   :  { %v107_v26 = vadd.f32 7.917595, %v52_v7  ;;  %vm54_vm3 = vcmp.lt.f32.partialorder %v52_v7, 10.0  ;;  %p169_p6 = pnand %p168_p5, %p162_p2 }
  0x2e   :  { %v57_v10 = vadd.f32 1.0, %v55_v8  ;;  %v66_v11 = vadd.f32 1.0, %v56_v9  ;;  %v60_v12 = vmul.f32 -0.5, %v55_v8  ;;  %v69_v13 = vmul.f32 -0.5, %v56_v9 }
  0x2f   :  { %v63_v15 = vand.u32 2147483647, %v55_v8  ;;  %v72_v17 = vand.u32 2147483647, %v56_v9 }
  0x30   :  { %113 = vlog2.f32 %v57_v10  ;;  %v61_v14 = vadd.f32 1.0, %v60_v12  ;;  %v70_v16 = vadd.f32 1.0, %v69_v13 }
  0x31   :  { %115 = vlog2.f32 %v66_v11  ;;  %vm64_vm0 = vcmp.lt.f32.partialorder %v63_v15, 0.0004427343  ;;  %vm73_vm1 = vcmp.lt.f32.partialorder %v72_v17, 0.0004427343 }
  0x32   :  { %v62_v18 = vmul.f32 %v61_v14, %v55_v8  ;;  %v71_v20 = vmul.f32 %v70_v16, %v56_v9 }
  0x3a   :  { %v114_v19 = vpop.eup %113 }
  0x3b   :  { %v116_v21 = vpop.eup %115  ;;  %v59_v22 = vmul.f32 0.6931472, %v114_v19 }
  0x3c   :  { %v68_v23 = vmul.f32 0.6931472, %v116_v21 }
  0x3d   :  { %v65_v25 = vsel %vm64_vm0, %v62_v18, %v59_v22 }
  0x3e   :  { %v74_v27 = vsel %vm73_vm1, %v71_v20, %v68_v23  ;;  %v75_v28 = vmul.f32 10.0, %v65_v25 }
  0x3f   :  { %v76_v29 = vmul.f32 10.0, %v74_v27 }
  0x40   :  { %v79_v30 = vsel %vm53_vm2, %v75_v28, %v106_v24 }
  0x41   :  { %v80_v31 = vsel %vm54_vm3, %v76_v29, %v107_v26 }
  0x42   :  { %v82_v32 = vadd.f32 %v80_v31, %v79_v30 }
  0x44   :  { %89 = vst [vmem:[#allocation8] sm:$0xff] %v82_v32 }
  0x45   :  { %172 = shalt.err (!%p169_p6)
}
  0x46   :  { %s173_s10 = scalar_lea.hbm %s247_s2, 128 }
  0x47   :  { %p174_p7 = scmp.ne.s32.totalorder %s247_s2, %s173_s10  ;;  %p177_p8 = scmp.lt.u32.totalorder %s173_s10, %s247_s2 }
  0x49   :  { %p179_p9 = pnand %p177_p8, %p174_p7 }
  0x4b   :  { %182 = shalt.err (!%p179_p9)
}
  0x4c   :  { %99 = dma.vmem_to_hbm [thread:$0]  %s97_s6, 128, %s247_s2, [#allocation5]  }
  0x4d   :  { %187 = dma.done.wait [#allocation5], 128  }
  0x4e   :  { %188 = vsyncadd [#allocation5], 4294967168 }
  0x4f   :  { %103 = vsyncpa [#allocation4], 1 }
  0x50   :  { %104 = vsyncpa [#allocation7], 1 }
  0x51   :  { %105 = vsyncpa [#allocation5], 1 }

</bundles_post_ra>
